<compile_context>
chip_gen: v7x
topology: tpu7x:2x2x1
jax: 0.10.0
libtpu: 0.0.40
codegen_flags: <defaults>
</compile_context>

<pallas_src>
import jax
import jax.numpy as jnp
from jax.experimental import pallas as pl
from jax.experimental.pallas import tpu as pltpu

IN_FEATURES = 5
OUT_FEATURES = 3

# Batches at or below this size skip Pallas (launch overhead dominates).
SMALL_BATCH_XLA_THRESHOLD = 1024

# Max batch-columns per grid step in the lane-dense layout.  Double-buffered
# VMEM at this size: x block 8x32768x4 B = 1 MiB, out block 1 MiB, x2 buffers
# each => ~4 MiB total, comfortably inside every generation's scoped budget.
MAX_TILE_COLS = 32768

_LANE = 128


def _round_up(v, m):
    return ((v + m - 1) // m) * m


def _linear_kernel(w_ref, b_ref, xT_ref, oT_ref):
    # w_ref:  (OUT_FEATURES, IN_FEATURES)  fp32 VMEM (PyTorch layout)
    # b_ref:  (OUT_FEATURES, 1)            fp32 VMEM
    # xT_ref: (IN_FEATURES, tile_cols)     fp32 VMEM (batch on lanes)
    # oT_ref: (OUT_FEATURES, tile_cols)    fp32 VMEM (batch on lanes)
    x = xT_ref[...]
    w = w_ref[...]
    # out[j, c] = b[j] + sum_k w[j, k] * x[k, c], computed as 5 broadcasted
    # VPU FMAs ((3,1) * (1,tc) outer-product style) -- no MXU involved.
    acc = w[:, 0:1] * x[0:1, :]
    for k in range(1, IN_FEATURES):
        acc = acc + w[:, k:k + 1] * x[k:k + 1, :]
    oT_ref[...] = acc + b_ref[...]


def _choose_tile_cols(n):
    """Pick the batch-column tile for the lane-dense layout."""
    if n <= _LANE:
        # Single full block; a block dim equal to the full array dim is allowed.
        return n
    # Keep >=2 grid steps so v7x's second TensorCore gets work, round to the
    # lane width (128) so blocks satisfy the (8,128) divisibility rule, and cap
    # the tile so per-step DMA stays well inside scoped VMEM on every chip.
    half = pl.cdiv(n, 2)
    return min(MAX_TILE_COLS, _round_up(half, _LANE))


def pallas_linear(x, weight, b_col):
    """x @ weight^T + b with a lane-dense Pallas TPU kernel.

    x:      (N, IN_FEATURES)             float32
    weight: (OUT_FEATURES, IN_FEATURES)  float32 (PyTorch layout)
    b_col:  (OUT_FEATURES, 1)            float32
    returns (N, OUT_FEATURES) float32
    """
    n = x.shape[0]
    assert x.shape == (n, IN_FEATURES)
    assert weight.shape == (OUT_FEATURES, IN_FEATURES)
    assert b_col.shape == (OUT_FEATURES, 1)

    # Layout plumbing: batch goes on the lane axis (last dim).
    xT = jnp.transpose(x)  # (IN_FEATURES, n)

    tile_cols = _choose_tile_cols(n)
    grid = (pl.cdiv(n, tile_cols),)

    cost = pl.CostEstimate(
        flops=2 * n * IN_FEATURES * OUT_FEATURES,
        transcendentals=0,
        bytes_accessed=4 * (n * IN_FEATURES
                            + IN_FEATURES * OUT_FEATURES
                            + OUT_FEATURES
                            + n * OUT_FEATURES),
    )

    oT = pl.pallas_call(
        _linear_kernel,
        out_shape=jax.ShapeDtypeStruct((OUT_FEATURES, n), jnp.float32),
        grid=grid,
        in_specs=[
            pl.BlockSpec((OUT_FEATURES, IN_FEATURES), lambda i: (0, 0)),
            pl.BlockSpec((OUT_FEATURES, 1), lambda i: (0, 0)),
            pl.BlockSpec((IN_FEATURES, tile_cols), lambda i: (0, i)),
        ],
        out_specs=pl.BlockSpec((OUT_FEATURES, tile_cols), lambda i: (0, i)),
        compiler_params=pltpu.CompilerParams(
            dimension_semantics=("parallel",)
        ),
        cost_estimate=cost,
    )(weight, b_col, xT)

    return jnp.transpose(oT)  # (N, OUT_FEATURES)


def init_model_params(key):
    """One-time parameter init; layout conversions hoisted out of the forward."""
    kw, kb = jax.random.split(key)
    bound = 1.0 / (IN_FEATURES ** 0.5)
    weight = jax.random.uniform(
        kw, (OUT_FEATURES, IN_FEATURES), jnp.float32, -bound, bound
    )
    bias = jax.random.uniform(kb, (OUT_FEATURES,), jnp.float32, -bound, bound)
    return {
        "weight": weight,                            # (3, 5) PyTorch layout (kernel input)
        "bias": bias,                                # (3,)
        "wt": jnp.asarray(weight.T),                 # (5, 3) XLA fast-path layout
        "b_col": bias.reshape(OUT_FEATURES, 1),      # (3, 1) kernel layout
    }


@jax.jit
def model_forward(params, x):
    # quant stub (identity) -> linear -> dequant stub (identity)
    n = x.shape[0]
    if n <= SMALL_BATCH_XLA_THRESHOLD:
        # Tiny batch: pallas_call launch overhead dominates; let XLA fuse it.
        return x @ params["wt"] + params["bias"]
    return pallas_linear(x, params["weight"], params["b_col"])


@jax.jit
def model_forward_pallas(params, x):
    # Same math, always through the Pallas kernel (used to exercise/validate it).
    return pallas_linear(x, params["weight"], params["b_col"])


if __name__ == "__main__":
    key = jax.random.PRNGKey(0)
    kx_small, kx_med, kparams = jax.random.split(key, 3)

    params = init_model_params(kparams)

    def reference(x):
        return x @ params["weight"].T + params["bias"]

    # Small input consistent with Linear(5, 3): batch=2, features=5.
    x_small = jax.random.normal(kx_small, (2, IN_FEATURES), jnp.float32)
    # Slightly larger batch to exercise the multi-step (partial-tile) grid path.
    x_med = jax.random.normal(kx_med, (384, IN_FEATURES), jnp.float32)

    out_small_pallas = model_forward_pallas(params, x_small)
    out_med_pallas = model_forward_pallas(params, x_med)
    out_small = model_forward(params, x_small)  # XLA fast path (bypass)
    jax.block_until_ready((out_small_pallas, out_med_pallas, out_small))

    assert out_small_pallas.shape == (2, OUT_FEATURES)
    assert out_med_pallas.shape == (384, OUT_FEATURES)
    assert out_small.shape == (2, OUT_FEATURES)
    assert jnp.allclose(out_small_pallas, reference(x_small), atol=1e-5, rtol=1e-5)
    assert jnp.allclose(out_med_pallas, reference(x_med), atol=1e-5, rtol=1e-5)
    assert jnp.allclose(out_small, reference(x_small), atol=1e-5, rtol=1e-5)

    print("KERNEL_OK")
</pallas_src>

<mosaic_0001>
module attributes {stable_mosaic.version = 11 : i64} {
  func.func @_linear_kernel(%arg0: i32, %arg1: memref<3x5xf32, #tpu.memory_space<vmem>>, %arg2: memref<3x1xf32, #tpu.memory_space<vmem>>, %arg3: memref<5x2xf32, #tpu.memory_space<vmem>>, %arg4: memref<3x2xf32, #tpu.memory_space<vmem>>) attributes {dimension_semantics = [#tpu.dimension_semantics<parallel>], iteration_bounds = array<i64: 1>, scalar_prefetch = 0 : i64, scratch_operands = 0 : i64, tpu.core_type = #tpu.core_type<tc>, window_params = [{pipeline_mode = #tpu.pipeline_mode<synchronous>, transform_indices = @transform_0, window_bounds = array<i64: 3, 5>}, {pipeline_mode = #tpu.pipeline_mode<synchronous>, transform_indices = @transform_1, window_bounds = array<i64: 3, 1>}, {transform_indices = @transform_2, window_bounds = array<i64: 5, 2>}, {transform_indices = @transform_3, window_bounds = array<i64: 3, 2>}]} {
    %c0 = arith.constant 0 : index
    %c0_0 = arith.constant 0 : index
    %0 = vector.load %arg3[%c0, %c0_0] : memref<5x2xf32, #tpu.memory_space<vmem>>, vector<5x2xf32>
    %c0_1 = arith.constant 0 : index
    %c0_2 = arith.constant 0 : index
    %1 = vector.load %arg1[%c0_1, %c0_2] : memref<3x5xf32, #tpu.memory_space<vmem>>, vector<3x5xf32>
    %2 = vector.extract_strided_slice %1 {offsets = [0, 0], sizes = [3, 1], strides = [1, 1]} : vector<3x5xf32> to vector<3x1xf32>
    %3 = vector.extract_strided_slice %0 {offsets = [0, 0], sizes = [1, 2], strides = [1, 1]} : vector<5x2xf32> to vector<1x2xf32>
    %4 = vector.broadcast %2 : vector<3x1xf32> to vector<3x2xf32>
    %5 = vector.broadcast %3 : vector<1x2xf32> to vector<3x2xf32>
    %6 = arith.mulf %4, %5 : vector<3x2xf32>
    %7 = vector.extract_strided_slice %1 {offsets = [0, 1], sizes = [3, 1], strides = [1, 1]} : vector<3x5xf32> to vector<3x1xf32>
    %8 = vector.extract_strided_slice %0 {offsets = [1, 0], sizes = [1, 2], strides = [1, 1]} : vector<5x2xf32> to vector<1x2xf32>
    %9 = vector.broadcast %7 : vector<3x1xf32> to vector<3x2xf32>
    %10 = vector.broadcast %8 : vector<1x2xf32> to vector<3x2xf32>
    %11 = arith.mulf %9, %10 : vector<3x2xf32>
    %12 = arith.addf %6, %11 : vector<3x2xf32>
    %13 = vector.extract_strided_slice %1 {offsets = [0, 2], sizes = [3, 1], strides = [1, 1]} : vector<3x5xf32> to vector<3x1xf32>
    %14 = vector.extract_strided_slice %0 {offsets = [2, 0], sizes = [1, 2], strides = [1, 1]} : vector<5x2xf32> to vector<1x2xf32>
    %15 = vector.broadcast %13 : vector<3x1xf32> to vector<3x2xf32>
    %16 = vector.broadcast %14 : vector<1x2xf32> to vector<3x2xf32>
    %17 = arith.mulf %15, %16 : vector<3x2xf32>
    %18 = arith.addf %12, %17 : vector<3x2xf32>
    %19 = vector.extract_strided_slice %1 {offsets = [0, 3], sizes = [3, 1], strides = [1, 1]} : vector<3x5xf32> to vector<3x1xf32>
    %20 = vector.extract_strided_slice %0 {offsets = [3, 0], sizes = [1, 2], strides = [1, 1]} : vector<5x2xf32> to vector<1x2xf32>
    %21 = vector.broadcast %19 : vector<3x1xf32> to vector<3x2xf32>
    %22 = vector.broadcast %20 : vector<1x2xf32> to vector<3x2xf32>
    %23 = arith.mulf %21, %22 : vector<3x2xf32>
    %24 = arith.addf %18, %23 : vector<3x2xf32>
    %25 = vector.extract_strided_slice %1 {offsets = [0, 4], sizes = [3, 1], strides = [1, 1]} : vector<3x5xf32> to vector<3x1xf32>
    %26 = vector.extract_strided_slice %0 {offsets = [4, 0], sizes = [1, 2], strides = [1, 1]} : vector<5x2xf32> to vector<1x2xf32>
    %27 = vector.broadcast %25 : vector<3x1xf32> to vector<3x2xf32>
    %28 = vector.broadcast %26 : vector<1x2xf32> to vector<3x2xf32>
    %29 = arith.mulf %27, %28 : vector<3x2xf32>
    %30 = arith.addf %24, %29 : vector<3x2xf32>
    %c0_3 = arith.constant 0 : index
    %c0_4 = arith.constant 0 : index
    %31 = vector.load %arg2[%c0_3, %c0_4] : memref<3x1xf32, #tpu.memory_space<vmem>>, vector<3x1xf32>
    %32 = vector.broadcast %31 : vector<3x1xf32> to vector<3x2xf32>
    %33 = arith.addf %30, %32 : vector<3x2xf32>
    %c0_5 = arith.constant 0 : index
    %c0_6 = arith.constant 0 : index
    %34 = vector.load %arg4[%c0_5, %c0_6] : memref<3x2xf32, #tpu.memory_space<vmem>>, vector<3x2xf32>
    tpu.vector_store %arg4[%c0_5, %c0_6], %33 {strides = array<i32>} : memref<3x2xf32, #tpu.memory_space<vmem>>, vector<3x2xf32>,
    return
  }
  func.func @transform_0(%arg0: i32) -> (i32, i32) {
    %c0_i32 = arith.constant 0 : i32
    %c0_i32_0 = arith.constant 0 : i32
    %c0_i32_1 = arith.constant 0 : i32
    return %c0_i32, %c0_i32_0 : i32, i32
  }
  func.func @transform_1(%arg0: i32) -> (i32, i32) {
    %c0_i32 = arith.constant 0 : i32
    %c0_i32_0 = arith.constant 0 : i32
    %c0_i32_1 = arith.constant 0 : i32
    return %c0_i32, %c0_i32_0 : i32, i32
  }
  func.func @transform_2(%arg0: i32) -> (i32, i32) {
    %c0_i32 = arith.constant 0 : i32
    %c0_i32_0 = arith.constant 0 : i32
    return %c0_i32, %arg0 : i32, i32
  }
  func.func @transform_3(%arg0: i32) -> (i32, i32) {
    %c0_i32 = arith.constant 0 : i32
    %c0_i32_0 = arith.constant 0 : i32
    return %c0_i32, %arg0 : i32, i32
  }
}

</mosaic_0001>

<bundles_post_ra>
// kernel: model_forward_pallas.1
= control target key start
LH: loop header
LB: loop body
LE: loop exit
PB: predicated region body
PF: predicated region fallthrough
CT: control target
= control target key end

     0   :  { %v90_v0 = vmov 0   ;;  %v91_v1 = vmov 2   ;;  %v92_v3 = vmov 1   ;;  %v93_v4 = vmov 3   ;;  %s127_s0 = inlined_call_operand.vmem [shape: f32[3,5], index: 0, kind: input, shape index: {}]   ;;  %s128_s1 = inlined_call_operand.vmem [shape: f32[3,1], index: 1, kind: input, shape index: {}]   ;;  %s129_s2 = inlined_call_operand.vmem [shape: f32[5,2], index: 2, kind: input, shape index: {}]   ;;  %s130_s3 = inlined_call_operand.vmem [shape: f32[3,2], index: 3, kind: output, shape index: {}]  }
   0x1   :  { %84 = vset.pattern.permute.xlu0 %v90_v0  ;;  %86 = vset.pattern.permute.xlu1 %v91_v1  ;;  %v15_v2 = vld [vmem:[%s127_s0] sm:$0x7]  ;;  %v94_v6 = vmov 4   ;;  %v21_v7 = vlaneseq  ;;  %vm73_vm0 = vcmask 10240  }
   0x2   :  { %18 = vperm.xlu0 %84, %v15_v2   ;;  %37 = vperm.xlu1 %86, %v15_v2   ;;  %v66_v5 = vld [vmem:[%s128_s1] sm:$0x7] }
   0x3   :  { %v22_v8 = vshrl.u32 %v21_v7, 7  ;;  %v14_v11 = vld [vmem:[%s129_s2] sm:$0x1f] }
   0x5   :  { %v23_v9 = vsub.s32 0, %v22_v8  ;;  %v32_v10 = vsub.s32 1, %v22_v8  ;;  %v42_v13 = vsub.s32 2, %v22_v8  ;;  %v52_v17 = vsub.s32 3, %v22_v8 }
   0x6   :  { %85 = vset.pattern.permute.xlu0 %v92_v3  ;;  %87 = vset.pattern.permute.xlu1 %v93_v4  ;;  %v62_v18 = vsub.s32 4, %v22_v8 }
   0x7   :  { %27 = vperm.xlu0 %85, %v15_v2   ;;  %47 = vperm.xlu1 %87, %v15_v2   ;;  %v24_v15 = vrot.slane %v14_v11, %v23_v9  ;;  %v33_v16 = vrot.slane %v14_v11, %v32_v10  ;;  %v43_v19 = vrot.slane %v14_v11, %v42_v13 }
   0x8   :  { %v53_v24 = vrot.slane %v14_v11, %v52_v17  ;;  %v63_v25 = vrot.slane %v14_v11, %v62_v18 }
   0xb   :  { %88 = vset.pattern.permute.xlu1 %v94_v6  ;;  %89 = vset.pattern.permute.xlu0 %v90_v0 }
   0xc   :  { %57 = vperm.xlu1 %88, %v15_v2   ;;  %69 = vperm.xlu0 %89, %v66_v5  }
  0x81   :  { %v19_v12 = vpop.permute.xlu0 %18  ;;  %v38_v14 = vpop.permute.xlu1 %37 }
  0x82   :  { %v25_v22 = vmul.f32 %v24_v15, %v19_v12  ;;  %v44_v26 = vmul.f32 %v43_v19, %v38_v14 }
  0x86   :  { %v28_v20 = vpop.permute.xlu0 %27  ;;  %v48_v21 = vpop.permute.xlu1 %47 }
  0x87   :  { %v34_v23 = vmul.f32 %v33_v16, %v28_v20  ;;  %v54_v29 = vmul.f32 %v53_v24, %v48_v21 }
  0x89   :  { %v35_v27 = vadd.f32 %v34_v23, %v25_v22 }
  0x8b   :  { %v45_v28 = vadd.f32 %v44_v26, %v35_v27  ;;  %v58_v30 = vpop.permute.xlu1 %57  ;;  %v70_v33 = vpop.permute.xlu0 %69 }
  0x8c   :  { %v64_v31 = vmul.f32 %v63_v25, %v58_v30 }
  0x8d   :  { %v55_v32 = vadd.f32 %v54_v29, %v45_v28 }
  0x8f   :  { %v65_v34 = vadd.f32 %v64_v31, %v55_v32 }
  0x91   :  { %v72_v35 = vadd.f32 %v70_v33, %v65_v34 }
  0x93   :  { %74 = vst.msk [vmem:[%s130_s3] sm:$0x7] %vm73_vm0, %v72_v35 }

</bundles_post_ra>
